<compile_context>
chip_gen: v6e
topology: v6e:2x2x1
jax: 0.10.0
libtpu: 0.0.40
codegen_flags: <defaults>
</compile_context>

<pallas_src>
import jax
import jax.numpy as jnp
from jax import lax
from jax.experimental import pallas as pl
from jax.experimental.pallas import tpu as pltpu


# ---------------------------------------------------------------------------
# Fused attention kernel (one (batch, q-tile) per grid step)
# ---------------------------------------------------------------------------
def _make_fused_attention_kernel(num_heads, head_dim, n_actual, n_pad, tq,
                                 compute_dtype):
    H, D = num_heads, head_dim
    C = H * D
    needs_mask = n_pad > n_actual
    nt_dims = (((1,), (1,)), ((), ()))   # contract last dims (q @ k^T, no k.T)
    nn_dims = (((1,), (0,)), ((), ()))   # standard matmul

    def kernel(x_ref, wq_ref, wk_ref, wv_ref, wproj_ref, bproj_ref, o_ref,
               q_scr, k_scr, v_scr):
        qi = pl.program_id(1)

        # --- QKV projection, once per batch element -------------------------
        @pl.when(qi == 0)
        def _():
            x = x_ref[0]                                          # (Np, C) cdt
            # Three separate projections: the f32 intermediate is (Np, C), not
            # (Np, 3C); results are cast to the compute dtype immediately.
            # The softmax scale is already folded into wq (wrapper).
            q_scr[...] = lax.dot_general(
                x, wq_ref[...], dimension_numbers=nn_dims,
                preferred_element_type=jnp.float32).astype(compute_dtype)
            k_scr[...] = lax.dot_general(
                x, wk_ref[...], dimension_numbers=nn_dims,
                preferred_element_type=jnp.float32).astype(compute_dtype)
            v_scr[...] = lax.dot_general(
                x, wv_ref[...], dimension_numbers=nn_dims,
                preferred_element_type=jnp.float32).astype(compute_dtype)

        # --- per-head attention for this q-row tile --------------------------
        row0 = pl.multiple_of(qi * tq, tq)
        q_rows = q_scr[pl.ds(row0, tq), :]                        # (tq, C) cdt
        k_all = k_scr[...]                                        # (Np, C) cdt
        v_all = v_scr[...]                                        # (Np, C) cdt

        if needs_mask:
            key_pad = lax.broadcasted_iota(jnp.int32, (tq, n_pad), 1) >= n_actual

        head_outs = []
        for h in range(H):
            lo, hi = h * D, (h + 1) * D
            q_h = q_rows[:, lo:hi]                                # (tq, D)
            k_h = k_all[:, lo:hi]                                 # (Np, D)
            v_h = v_all[:, lo:hi]                                 # (Np, D)

            s = lax.dot_general(q_h, k_h, dimension_numbers=nt_dims,
                                preferred_element_type=jnp.float32)  # (tq, Np)
            if needs_mask:
                s = jnp.where(key_pad, jnp.float32(-1e30), s)

            # Stable softmax in f32; 1/sum deferred until after p @ v.
            s = s - jnp.max(s, axis=-1, keepdims=True)
            p = jnp.exp(s)
            denom = jnp.sum(p, axis=-1, keepdims=True)            # (tq, 1)

            o_h = lax.dot_general(p.astype(compute_dtype), v_h,
                                  dimension_numbers=nn_dims,
                                  preferred_element_type=jnp.float32)  # (tq, D)
            # NOTE: approx=True uses the EUP reciprocal (~1e-3 rel error);
            # switch to approx=False for bit-closer parity if required.
            head_outs.append(o_h * pl.reciprocal(denom, approx=True))

        # Lane-dense head merge: one full-width (tq, C) value, no per-head
        # masked column stores.
        merged = jnp.concatenate(head_outs, axis=-1).astype(compute_dtype)

        # --- output projection + bias ----------------------------------------
        y = lax.dot_general(merged, wproj_ref[...], dimension_numbers=nn_dims,
                            preferred_element_type=jnp.float32)   # (tq, C) f32
        y = y + bproj_ref[...].astype(jnp.float32)
        o_ref[0] = y.astype(o_ref.dtype)

    return kernel


# ---------------------------------------------------------------------------
# Wrapper: full Attention forward
# ---------------------------------------------------------------------------
def attention_forward(x, params, num_heads, *, compute_dtype=jnp.bfloat16,
                      q_tile=128):
    """softmax((x Wq)(x Wk)^T) (x Wv)  ->  proj (+bias), per head."""
    B, N, C = x.shape
    assert C % num_heads == 0
    D = C // num_heads
    scale = D ** (-0.5)

    # --- N padding / q-row tiling -------------------------------------------
    if N >= q_tile:
        n_pad = pl.cdiv(N, q_tile) * q_tile
        tq = q_tile
    else:
        n_pad = max(8, ((N + 7) // 8) * 8)
        tq = n_pad
    n_qt = n_pad // tq

    # --- cast / pad inputs, split + pre-scale weights in the wrapper --------
    x_c = x.astype(compute_dtype)
    if n_pad != N:
        x_c = jnp.pad(x_c, ((0, 0), (0, n_pad - N), (0, 0)))

    w_qkv = params["w_qkv"]
    w_q = (w_qkv[:, :C] * scale).astype(compute_dtype)   # scale folded into Wq
    w_k = w_qkv[:, C:2 * C].astype(compute_dtype)
    w_v = w_qkv[:, 2 * C:].astype(compute_dtype)
    w_proj = params["w_proj"].astype(compute_dtype)
    b_proj = params["b_proj"].reshape(1, C).astype(jnp.float32)

    kernel = _make_fused_attention_kernel(num_heads, D, N, n_pad, tq,
                                          compute_dtype)

    # --- VMEM budget sized to the real footprint (with headroom) ------------
    cdt = jnp.dtype(compute_dtype).itemsize
    odt = jnp.dtype(x.dtype).itemsize
    est = (4 * C * C * cdt + 4 * C                 # weights + bias (1-buffered)
           + 2 * n_pad * C * cdt                   # x block (double-buffered)
           + 2 * tq * C * odt                      # out block (double-buffered)
           + 3 * n_pad * C * cdt                   # q/k/v scratches
           + 2 * n_pad * C * 4                     # f32 projection intermediates
           + 2 * tq * n_pad * 4                    # f32 score / prob block
           + 3 * tq * C * 4)                       # head outs / merged / y
    vmem_limit = int(min(max(est * 3 // 2 + (2 << 20), 16 << 20), 96 << 20))

    def _const_spec(shape):
        # Grid-invariant operands: single-buffer (no point double-buffering
        # data whose index_map never changes).
        return pl.BlockSpec(shape, lambda b, qi: (0, 0),
                            pipeline_mode=pl.Buffered(1))

    out = pl.pallas_call(
        kernel,
        out_shape=jax.ShapeDtypeStruct((B, n_pad, C), x.dtype),
        grid=(B, n_qt),
        in_specs=[
            pl.BlockSpec((1, n_pad, C), lambda b, qi: (b, 0, 0)),  # x
            _const_spec((C, C)),                                   # W_q (scaled)
            _const_spec((C, C)),                                   # W_k
            _const_spec((C, C)),                                   # W_v
            _const_spec((C, C)),                                   # W_proj
            _const_spec((1, C)),                                   # b_proj
        ],
        out_specs=pl.BlockSpec((1, tq, C), lambda b, qi: (b, qi, 0)),
        scratch_shapes=[
            pltpu.VMEM((n_pad, C), compute_dtype),   # q (scaled)
            pltpu.VMEM((n_pad, C), compute_dtype),   # k
            pltpu.VMEM((n_pad, C), compute_dtype),   # v
        ],
        compiler_params=pltpu.CompilerParams(
            # q-tile axis must stay "arbitrary": the @pl.when(qi==0) K/V init
            # relies on sequential execution within each batch element.
            dimension_semantics=("parallel", "arbitrary"),
            vmem_limit_bytes=vmem_limit),
    )(x_c, w_q, w_k, w_v, w_proj, b_proj)

    if n_pad != N:
        out = out[:, :N, :]
    return out


# ---------------------------------------------------------------------------
# Params + pure-JAX reference
# ---------------------------------------------------------------------------
def init_params(key, dim):
    k1, k2, k3 = jax.random.split(key, 3)
    lim = 1.0 / jnp.sqrt(dim)
    return {
        # stored as (in, out) so kernels compute x @ W
        "w_qkv": jax.random.uniform(k1, (dim, dim * 3), jnp.float32, -lim, lim),
        "w_proj": jax.random.uniform(k2, (dim, dim), jnp.float32, -lim, lim),
        "b_proj": jax.random.uniform(k3, (dim,), jnp.float32, -lim, lim),
    }


def attention_reference(x, params, num_heads):
    """Pure-JAX f32 reference matching the PyTorch module."""
    B, N, C = x.shape
    H = num_heads
    D = C // H
    scale = D ** (-0.5)
    qkv = (x @ params["w_qkv"]).reshape(B, N, 3, H, D).transpose(2, 0, 3, 1, 4)
    q, k, v = qkv[0], qkv[1], qkv[2]
    attn = jnp.einsum("bhnd,bhmd->bhnm", q, k) * scale
    attn = jax.nn.softmax(attn, axis=-1)
    o = jnp.einsum("bhnm,bhmd->bhnd", attn, v)
    o = o.transpose(0, 2, 1, 3).reshape(B, N, C)
    return o @ params["w_proj"] + params["b_proj"]


if __name__ == "__main__":
    key = jax.random.PRNGKey(0)

    # --- test 1: module-default small shape (single q-tile, no padding) -----
    B, N, C = 2, 8, 32
    num_heads = 8
    kx, kp, kx2, kp2 = jax.random.split(key, 4)
    x = jax.random.normal(kx, (B, N, C), jnp.float32)
    params = init_params(kp, C)
    ref = attention_reference(x, params, num_heads)

    out = jax.block_until_ready(attention_forward(x, params, num_heads))
    assert out.shape == (B, N, C)
    assert jnp.allclose(out, ref, atol=5e-2, rtol=5e-2), "bf16 path mismatch"

    out_f32 = jax.block_until_ready(
        attention_forward(x, params, num_heads, compute_dtype=jnp.float32))
    assert jnp.allclose(out_f32, ref, atol=1e-2, rtol=1e-2), "f32 path mismatch"

    # --- test 2: non-multiple N + multiple q-tiles (exercises padding/mask
    # and the @pl.when(qi==0) K/V reuse across q-tiles) ------------------------
    B2, N2, C2, H2 = 2, 12, 32, 4
    x2 = jax.random.normal(kx2, (B2, N2, C2), jnp.float32)
    params2 = init_params(kp2, C2)
    ref2 = attention_reference(x2, params2, H2)
    out2 = jax.block_until_ready(
        attention_forward(x2, params2, H2, compute_dtype=jnp.float32, q_tile=8))
    assert out2.shape == (B2, N2, C2)
    assert jnp.allclose(out2, ref2, atol=1e-2, rtol=1e-2), "padded path mismatch"

    print("KERNEL_OK")
</pallas_src>

<mosaic_0001>
module attributes {stable_mosaic.version = 11 : i64} {
  func.func @kernel(%arg0: i32, %arg1: i32, %arg2: memref<1x8x32xbf16, #tpu.memory_space<vmem>>, %arg3: memref<32x32xbf16, #tpu.memory_space<vmem>>, %arg4: memref<32x32xbf16, #tpu.memory_space<vmem>>, %arg5: memref<32x32xbf16, #tpu.memory_space<vmem>>, %arg6: memref<32x32xbf16, #tpu.memory_space<vmem>>, %arg7: memref<1x32xf32, #tpu.memory_space<vmem>>, %arg8: memref<1x8x32xf32, #tpu.memory_space<vmem>>, %arg9: memref<8x32xbf16, #tpu.memory_space<vmem>>, %arg10: memref<8x32xbf16, #tpu.memory_space<vmem>>, %arg11: memref<8x32xbf16, #tpu.memory_space<vmem>>) attributes {dimension_semantics = [#tpu.dimension_semantics<parallel>, #tpu.dimension_semantics<arbitrary>], iteration_bounds = array<i64: 2, 1>, scalar_prefetch = 0 : i64, scratch_operands = 3 : i64, tpu.core_type = #tpu.core_type<tc>, window_params = [{transform_indices = @transform_0, window_bounds = array<i64: 1, 8, 32>}, {pipeline_mode = #tpu.pipeline_mode<synchronous>, transform_indices = @transform_1, window_bounds = array<i64: 32, 32>}, {pipeline_mode = #tpu.pipeline_mode<synchronous>, transform_indices = @transform_2, window_bounds = array<i64: 32, 32>}, {pipeline_mode = #tpu.pipeline_mode<synchronous>, transform_indices = @transform_3, window_bounds = array<i64: 32, 32>}, {pipeline_mode = #tpu.pipeline_mode<synchronous>, transform_indices = @transform_4, window_bounds = array<i64: 32, 32>}, {pipeline_mode = #tpu.pipeline_mode<synchronous>, transform_indices = @transform_5, window_bounds = array<i64: 1, 32>}, {transform_indices = @transform_6, window_bounds = array<i64: 1, 8, 32>}]} {
    %c0_i32 = arith.constant 0 : i32
    %0 = arith.cmpi eq, %arg1, %c0_i32 : i32
    %1 = arith.extui %0 : i1 to i32
    %c0_i32_0 = arith.constant 0 : i32
    %2 = arith.cmpi ne, %1, %c0_i32_0 : i32
    scf.if %2 {
      %c0_44 = arith.constant 0 : index
      %c0_45 = arith.constant 0 : index
      %c0_46 = arith.constant 0 : index
      %147 = vector.load %arg2[%c0_44, %c0_45, %c0_46] : memref<1x8x32xbf16, #tpu.memory_space<vmem>>, vector<1x8x32xbf16>
      %148 = vector.shape_cast %147 : vector<1x8x32xbf16> to vector<8x32xbf16>
      %c0_47 = arith.constant 0 : index
      %c0_48 = arith.constant 0 : index
      %149 = vector.load %arg3[%c0_47, %c0_48] : memref<32x32xbf16, #tpu.memory_space<vmem>>, vector<32x32xbf16>
      %cst_49 = arith.constant dense<0.000000e+00> : vector<8x32xf32>
      %150 = tpu.matmul %148, %149, %cst_49 {dimension_numbers = #tpu.dot_dimension_numbers<[1], [0], [0], [1], [0, 0, 1, 1], [], []>} : vector<8x32xbf16>, vector<32x32xbf16>, vector<8x32xf32> -> vector<8x32xf32>
      %151 = arith.truncf %150 : vector<8x32xf32> to vector<8x32xbf16>
      %c0_50 = arith.constant 0 : index
      %c0_51 = arith.constant 0 : index
      %152 = vector.load %arg9[%c0_50, %c0_51] : memref<8x32xbf16, #tpu.memory_space<vmem>>, vector<8x32xbf16>
      tpu.vector_store %arg9[%c0_50, %c0_51], %151 {strides = array<i32>} : memref<8x32xbf16, #tpu.memory_space<vmem>>, vector<8x32xbf16>,
      %c0_52 = arith.constant 0 : index
      %c0_53 = arith.constant 0 : index
      %153 = vector.load %arg4[%c0_52, %c0_53] : memref<32x32xbf16, #tpu.memory_space<vmem>>, vector<32x32xbf16>
      %cst_54 = arith.constant dense<0.000000e+00> : vector<8x32xf32>
      %154 = tpu.matmul %148, %153, %cst_54 {dimension_numbers = #tpu.dot_dimension_numbers<[1], [0], [0], [1], [0, 0, 1, 1], [], []>} : vector<8x32xbf16>, vector<32x32xbf16>, vector<8x32xf32> -> vector<8x32xf32>
      %155 = arith.truncf %154 : vector<8x32xf32> to vector<8x32xbf16>
      %c0_55 = arith.constant 0 : index
      %c0_56 = arith.constant 0 : index
      %156 = vector.load %arg10[%c0_55, %c0_56] : memref<8x32xbf16, #tpu.memory_space<vmem>>, vector<8x32xbf16>
      tpu.vector_store %arg10[%c0_55, %c0_56], %155 {strides = array<i32>} : memref<8x32xbf16, #tpu.memory_space<vmem>>, vector<8x32xbf16>,
      %c0_57 = arith.constant 0 : index
      %c0_58 = arith.constant 0 : index
      %157 = vector.load %arg5[%c0_57, %c0_58] : memref<32x32xbf16, #tpu.memory_space<vmem>>, vector<32x32xbf16>
      %cst_59 = arith.constant dense<0.000000e+00> : vector<8x32xf32>
      %158 = tpu.matmul %148, %157, %cst_59 {dimension_numbers = #tpu.dot_dimension_numbers<[1], [0], [0], [1], [0, 0, 1, 1], [], []>} : vector<8x32xbf16>, vector<32x32xbf16>, vector<8x32xf32> -> vector<8x32xf32>
      %159 = arith.truncf %158 : vector<8x32xf32> to vector<8x32xbf16>
      %c0_60 = arith.constant 0 : index
      %c0_61 = arith.constant 0 : index
      %160 = vector.load %arg11[%c0_60, %c0_61] : memref<8x32xbf16, #tpu.memory_space<vmem>>, vector<8x32xbf16>
      tpu.vector_store %arg11[%c0_60, %c0_61], %159 {strides = array<i32>} : memref<8x32xbf16, #tpu.memory_space<vmem>>, vector<8x32xbf16>,
    } else {
    }
    %c8_i32 = arith.constant 8 : i32
    %3 = arith.muli %arg1, %c8_i32 : i32
    %4 = tpu.assume_multiple %3, 8 : i32
    %5 = arith.index_cast %4 : i32 to index
    %c0 = arith.constant 0 : index
    %6 = vector.load %arg9[%5, %c0] : memref<8x32xbf16, #tpu.memory_space<vmem>>, vector<8x32xbf16>
    %c0_1 = arith.constant 0 : index
    %c0_2 = arith.constant 0 : index
    %7 = vector.load %arg10[%c0_1, %c0_2] : memref<8x32xbf16, #tpu.memory_space<vmem>>, vector<8x32xbf16>
    %c0_3 = arith.constant 0 : index
    %c0_4 = arith.constant 0 : index
    %8 = vector.load %arg11[%c0_3, %c0_4] : memref<8x32xbf16, #tpu.memory_space<vmem>>, vector<8x32xbf16>
    %9 = vector.extract_strided_slice %6 {offsets = [0, 0], sizes = [8, 4], strides = [1, 1]} : vector<8x32xbf16> to vector<8x4xbf16>
    %10 = vector.extract_strided_slice %7 {offsets = [0, 0], sizes = [8, 4], strides = [1, 1]} : vector<8x32xbf16> to vector<8x4xbf16>
    %11 = vector.extract_strided_slice %8 {offsets = [0, 0], sizes = [8, 4], strides = [1, 1]} : vector<8x32xbf16> to vector<8x4xbf16>
    %cst = arith.constant dense<0.000000e+00> : vector<8x8xf32>
    %12 = tpu.matmul %9, %10, %cst {dimension_numbers = #tpu.dot_dimension_numbers<[1], [1], [0], [0], [0, 0, 1, 0], [], []>} : vector<8x4xbf16>, vector<8x4xbf16>, vector<8x8xf32> -> vector<8x8xf32>
    %cst_5 = arith.constant dense<0xFF800000> : vector<8xf32>
    %13 = vector.multi_reduction <maximumf>, %12, %cst_5 [1] : vector<8x8xf32> to vector<8xf32>
    %14 = vector.shape_cast %13 : vector<8xf32> to vector<8x1xf32>
    %15 = vector.broadcast %14 : vector<8x1xf32> to vector<8x8xf32>
    %16 = arith.subf %12, %15 : vector<8x8xf32>
    %17 = math.exp %16 : vector<8x8xf32>
    %cst_6 = arith.constant dense<0.000000e+00> : vector<8xf32>
    %18 = vector.multi_reduction <add>, %17, %cst_6 [1] : vector<8x8xf32> to vector<8xf32>
    %19 = vector.shape_cast %18 : vector<8xf32> to vector<8x1xf32>
    %20 = arith.truncf %17 : vector<8x8xf32> to vector<8x8xbf16>
    %cst_7 = arith.constant dense<0.000000e+00> : vector<8x4xf32>
    %21 = tpu.matmul %20, %11, %cst_7 {dimension_numbers = #tpu.dot_dimension_numbers<[1], [0], [0], [1], [0, 0, 1, 1], [], []>} : vector<8x8xbf16>, vector<8x4xbf16>, vector<8x4xf32> -> vector<8x4xf32>
    %22 = tpu.reciprocal %19 {approx = true} : vector<8x1xf32> -> vector<8x1xf32>
    %23 = vector.broadcast %22 : vector<8x1xf32> to vector<8x4xf32>
    %24 = arith.mulf %21, %23 : vector<8x4xf32>
    %25 = vector.extract_strided_slice %6 {offsets = [0, 4], sizes = [8, 4], strides = [1, 1]} : vector<8x32xbf16> to vector<8x4xbf16>
    %26 = vector.extract_strided_slice %7 {offsets = [0, 4], sizes = [8, 4], strides = [1, 1]} : vector<8x32xbf16> to vector<8x4xbf16>
    %27 = vector.extract_strided_slice %8 {offsets = [0, 4], sizes = [8, 4], strides = [1, 1]} : vector<8x32xbf16> to vector<8x4xbf16>
    %cst_8 = arith.constant dense<0.000000e+00> : vector<8x8xf32>
    %28 = tpu.matmul %25, %26, %cst_8 {dimension_numbers = #tpu.dot_dimension_numbers<[1], [1], [0], [0], [0, 0, 1, 0], [], []>} : vector<8x4xbf16>, vector<8x4xbf16>, vector<8x8xf32> -> vector<8x8xf32>
    %cst_9 = arith.constant dense<0xFF800000> : vector<8xf32>
    %29 = vector.multi_reduction <maximumf>, %28, %cst_9 [1] : vector<8x8xf32> to vector<8xf32>
    %30 = vector.shape_cast %29 : vector<8xf32> to vector<8x1xf32>
    %31 = vector.broadcast %30 : vector<8x1xf32> to vector<8x8xf32>
    %32 = arith.subf %28, %31 : vector<8x8xf32>
    %33 = math.exp %32 : vector<8x8xf32>
    %cst_10 = arith.constant dense<0.000000e+00> : vector<8xf32>
    %34 = vector.multi_reduction <add>, %33, %cst_10 [1] : vector<8x8xf32> to vector<8xf32>
    %35 = vector.shape_cast %34 : vector<8xf32> to vector<8x1xf32>
    %36 = arith.truncf %33 : vector<8x8xf32> to vector<8x8xbf16>
    %cst_11 = arith.constant dense<0.000000e+00> : vector<8x4xf32>
    %37 = tpu.matmul %36, %27, %cst_11 {dimension_numbers = #tpu.dot_dimension_numbers<[1], [0], [0], [1], [0, 0, 1, 1], [], []>} : vector<8x8xbf16>, vector<8x4xbf16>, vector<8x4xf32> -> vector<8x4xf32>
    %38 = tpu.reciprocal %35 {approx = true} : vector<8x1xf32> -> vector<8x1xf32>
    %39 = vector.broadcast %38 : vector<8x1xf32> to vector<8x4xf32>
    %40 = arith.mulf %37, %39 : vector<8x4xf32>
    %41 = vector.extract_strided_slice %6 {offsets = [0, 8], sizes = [8, 4], strides = [1, 1]} : vector<8x32xbf16> to vector<8x4xbf16>
    %42 = vector.extract_strided_slice %7 {offsets = [0, 8], sizes = [8, 4], strides = [1, 1]} : vector<8x32xbf16> to vector<8x4xbf16>
    %43 = vector.extract_strided_slice %8 {offsets = [0, 8], sizes = [8, 4], strides = [1, 1]} : vector<8x32xbf16> to vector<8x4xbf16>
    %cst_12 = arith.constant dense<0.000000e+00> : vector<8x8xf32>
    %44 = tpu.matmul %41, %42, %cst_12 {dimension_numbers = #tpu.dot_dimension_numbers<[1], [1], [0], [0], [0, 0, 1, 0], [], []>} : vector<8x4xbf16>, vector<8x4xbf16>, vector<8x8xf32> -> vector<8x8xf32>
    %cst_13 = arith.constant dense<0xFF800000> : vector<8xf32>
    %45 = vector.multi_reduction <maximumf>, %44, %cst_13 [1] : vector<8x8xf32> to vector<8xf32>
    %46 = vector.shape_cast %45 : vector<8xf32> to vector<8x1xf32>
    %47 = vector.broadcast %46 : vector<8x1xf32> to vector<8x8xf32>
    %48 = arith.subf %44, %47 : vector<8x8xf32>
    %49 = math.exp %48 : vector<8x8xf32>
    %cst_14 = arith.constant dense<0.000000e+00> : vector<8xf32>
    %50 = vector.multi_reduction <add>, %49, %cst_14 [1] : vector<8x8xf32> to vector<8xf32>
    %51 = vector.shape_cast %50 : vector<8xf32> to vector<8x1xf32>
    %52 = arith.truncf %49 : vector<8x8xf32> to vector<8x8xbf16>
    %cst_15 = arith.constant dense<0.000000e+00> : vector<8x4xf32>
    %53 = tpu.matmul %52, %43, %cst_15 {dimension_numbers = #tpu.dot_dimension_numbers<[1], [0], [0], [1], [0, 0, 1, 1], [], []>} : vector<8x8xbf16>, vector<8x4xbf16>, vector<8x4xf32> -> vector<8x4xf32>
    %54 = tpu.reciprocal %51 {approx = true} : vector<8x1xf32> -> vector<8x1xf32>
    %55 = vector.broadcast %54 : vector<8x1xf32> to vector<8x4xf32>
    %56 = arith.mulf %53, %55 : vector<8x4xf32>
    %57 = vector.extract_strided_slice %6 {offsets = [0, 12], sizes = [8, 4], strides = [1, 1]} : vector<8x32xbf16> to vector<8x4xbf16>
    %58 = vector.extract_strided_slice %7 {offsets = [0, 12], sizes = [8, 4], strides = [1, 1]} : vector<8x32xbf16> to vector<8x4xbf16>
    %59 = vector.extract_strided_slice %8 {offsets = [0, 12], sizes = [8, 4], strides = [1, 1]} : vector<8x32xbf16> to vector<8x4xbf16>
    %cst_16 = arith.constant dense<0.000000e+00> : vector<8x8xf32>
    %60 = tpu.matmul %57, %58, %cst_16 {dimension_numbers = #tpu.dot_dimension_numbers<[1], [1], [0], [0], [0, 0, 1, 0], [], []>} : vector<8x4xbf16>, vector<8x4xbf16>, vector<8x8xf32> -> vector<8x8xf32>
    %cst_17 = arith.constant dense<0xFF800000> : vector<8xf32>
    %61 = vector.multi_reduction <maximumf>, %60, %cst_17 [1] : vector<8x8xf32> to vector<8xf32>
    %62 = vector.shape_cast %61 : vector<8xf32> to vector<8x1xf32>
    %63 = vector.broadcast %62 : vector<8x1xf32> to vector<8x8xf32>
    %64 = arith.subf %60, %63 : vector<8x8xf32>
    %65 = math.exp %64 : vector<8x8xf32>
    %cst_18 = arith.constant dense<0.000000e+00> : vector<8xf32>
    %66 = vector.multi_reduction <add>, %65, %cst_18 [1] : vector<8x8xf32> to vector<8xf32>
    %67 = vector.shape_cast %66 : vector<8xf32> to vector<8x1xf32>
    %68 = arith.truncf %65 : vector<8x8xf32> to vector<8x8xbf16>
    %cst_19 = arith.constant dense<0.000000e+00> : vector<8x4xf32>
    %69 = tpu.matmul %68, %59, %cst_19 {dimension_numbers = #tpu.dot_dimension_numbers<[1], [0], [0], [1], [0, 0, 1, 1], [], []>} : vector<8x8xbf16>, vector<8x4xbf16>, vector<8x4xf32> -> vector<8x4xf32>
    %70 = tpu.reciprocal %67 {approx = true} : vector<8x1xf32> -> vector<8x1xf32>
    %71 = vector.broadcast %70 : vector<8x1xf32> to vector<8x4xf32>
    %72 = arith.mulf %69, %71 : vector<8x4xf32>
    %73 = vector.extract_strided_slice %6 {offsets = [0, 16], sizes = [8, 4], strides = [1, 1]} : vector<8x32xbf16> to vector<8x4xbf16>
    %74 = vector.extract_strided_slice %7 {offsets = [0, 16], sizes = [8, 4], strides = [1, 1]} : vector<8x32xbf16> to vector<8x4xbf16>
    %75 = vector.extract_strided_slice %8 {offsets = [0, 16], sizes = [8, 4], strides = [1, 1]} : vector<8x32xbf16> to vector<8x4xbf16>
    %cst_20 = arith.constant dense<0.000000e+00> : vector<8x8xf32>
    %76 = tpu.matmul %73, %74, %cst_20 {dimension_numbers = #tpu.dot_dimension_numbers<[1], [1], [0], [0], [0, 0, 1, 0], [], []>} : vector<8x4xbf16>, vector<8x4xbf16>, vector<8x8xf32> -> vector<8x8xf32>
    %cst_21 = arith.constant dense<0xFF800000> : vector<8xf32>
    %77 = vector.multi_reduction <maximumf>, %76, %cst_21 [1] : vector<8x8xf32> to vector<8xf32>
    %78 = vector.shape_cast %77 : vector<8xf32> to vector<8x1xf32>
    %79 = vector.broadcast %78 : vector<8x1xf32> to vector<8x8xf32>
    %80 = arith.subf %76, %79 : vector<8x8xf32>
    %81 = math.exp %80 : vector<8x8xf32>
    %cst_22 = arith.constant dense<0.000000e+00> : vector<8xf32>
    %82 = vector.multi_reduction <add>, %81, %cst_22 [1] : vector<8x8xf32> to vector<8xf32>
    %83 = vector.shape_cast %82 : vector<8xf32> to vector<8x1xf32>
    %84 = arith.truncf %81 : vector<8x8xf32> to vector<8x8xbf16>
    %cst_23 = arith.constant dense<0.000000e+00> : vector<8x4xf32>
    %85 = tpu.matmul %84, %75, %cst_23 {dimension_numbers = #tpu.dot_dimension_numbers<[1], [0], [0], [1], [0, 0, 1, 1], [], []>} : vector<8x8xbf16>, vector<8x4xbf16>, vector<8x4xf32> -> vector<8x4xf32>
    %86 = tpu.reciprocal %83 {approx = true} : vector<8x1xf32> -> vector<8x1xf32>
    %87 = vector.broadcast %86 : vector<8x1xf32> to vector<8x4xf32>
    %88 = arith.mulf %85, %87 : vector<8x4xf32>
    %89 = vector.extract_strided_slice %6 {offsets = [0, 20], sizes = [8, 4], strides = [1, 1]} : vector<8x32xbf16> to vector<8x4xbf16>
    %90 = vector.extract_strided_slice %7 {offsets = [0, 20], sizes = [8, 4], strides = [1, 1]} : vector<8x32xbf16> to vector<8x4xbf16>
    %91 = vector.extract_strided_slice %8 {offsets = [0, 20], sizes = [8, 4], strides = [1, 1]} : vector<8x32xbf16> to vector<8x4xbf16>
    %cst_24 = arith.constant dense<0.000000e+00> : vector<8x8xf32>
    %92 = tpu.matmul %89, %90, %cst_24 {dimension_numbers = #tpu.dot_dimension_numbers<[1], [1], [0], [0], [0, 0, 1, 0], [], []>} : vector<8x4xbf16>, vector<8x4xbf16>, vector<8x8xf32> -> vector<8x8xf32>
    %cst_25 = arith.constant dense<0xFF800000> : vector<8xf32>
    %93 = vector.multi_reduction <maximumf>, %92, %cst_25 [1] : vector<8x8xf32> to vector<8xf32>
    %94 = vector.shape_cast %93 : vector<8xf32> to vector<8x1xf32>
    %95 = vector.broadcast %94 : vector<8x1xf32> to vector<8x8xf32>
    %96 = arith.subf %92, %95 : vector<8x8xf32>
    %97 = math.exp %96 : vector<8x8xf32>
    %cst_26 = arith.constant dense<0.000000e+00> : vector<8xf32>
    %98 = vector.multi_reduction <add>, %97, %cst_26 [1] : vector<8x8xf32> to vector<8xf32>
    %99 = vector.shape_cast %98 : vector<8xf32> to vector<8x1xf32>
    %100 = arith.truncf %97 : vector<8x8xf32> to vector<8x8xbf16>
    %cst_27 = arith.constant dense<0.000000e+00> : vector<8x4xf32>
    %101 = tpu.matmul %100, %91, %cst_27 {dimension_numbers = #tpu.dot_dimension_numbers<[1], [0], [0], [1], [0, 0, 1, 1], [], []>} : vector<8x8xbf16>, vector<8x4xbf16>, vector<8x4xf32> -> vector<8x4xf32>
    %102 = tpu.reciprocal %99 {approx = true} : vector<8x1xf32> -> vector<8x1xf32>
    %103 = vector.broadcast %102 : vector<8x1xf32> to vector<8x4xf32>
    %104 = arith.mulf %101, %103 : vector<8x4xf32>
    %105 = vector.extract_strided_slice %6 {offsets = [0, 24], sizes = [8, 4], strides = [1, 1]} : vector<8x32xbf16> to vector<8x4xbf16>
    %106 = vector.extract_strided_slice %7 {offsets = [0, 24], sizes = [8, 4], strides = [1, 1]} : vector<8x32xbf16> to vector<8x4xbf16>
    %107 = vector.extract_strided_slice %8 {offsets = [0, 24], sizes = [8, 4], strides = [1, 1]} : vector<8x32xbf16> to vector<8x4xbf16>
    %cst_28 = arith.constant dense<0.000000e+00> : vector<8x8xf32>
    %108 = tpu.matmul %105, %106, %cst_28 {dimension_numbers = #tpu.dot_dimension_numbers<[1], [1], [0], [0], [0, 0, 1, 0], [], []>} : vector<8x4xbf16>, vector<8x4xbf16>, vector<8x8xf32> -> vector<8x8xf32>
    %cst_29 = arith.constant dense<0xFF800000> : vector<8xf32>
    %109 = vector.multi_reduction <maximumf>, %108, %cst_29 [1] : vector<8x8xf32> to vector<8xf32>
    %110 = vector.shape_cast %109 : vector<8xf32> to vector<8x1xf32>
    %111 = vector.broadcast %110 : vector<8x1xf32> to vector<8x8xf32>
    %112 = arith.subf %108, %111 : vector<8x8xf32>
    %113 = math.exp %112 : vector<8x8xf32>
    %cst_30 = arith.constant dense<0.000000e+00> : vector<8xf32>
    %114 = vector.multi_reduction <add>, %113, %cst_30 [1] : vector<8x8xf32> to vector<8xf32>
    %115 = vector.shape_cast %114 : vector<8xf32> to vector<8x1xf32>
    %116 = arith.truncf %113 : vector<8x8xf32> to vector<8x8xbf16>
    %cst_31 = arith.constant dense<0.000000e+00> : vector<8x4xf32>
    %117 = tpu.matmul %116, %107, %cst_31 {dimension_numbers = #tpu.dot_dimension_numbers<[1], [0], [0], [1], [0, 0, 1, 1], [], []>} : vector<8x8xbf16>, vector<8x4xbf16>, vector<8x4xf32> -> vector<8x4xf32>
    %118 = tpu.reciprocal %115 {approx = true} : vector<8x1xf32> -> vector<8x1xf32>
    %119 = vector.broadcast %118 : vector<8x1xf32> to vector<8x4xf32>
    %120 = arith.mulf %117, %119 : vector<8x4xf32>
    %121 = vector.extract_strided_slice %6 {offsets = [0, 28], sizes = [8, 4], strides = [1, 1]} : vector<8x32xbf16> to vector<8x4xbf16>
    %122 = vector.extract_strided_slice %7 {offsets = [0, 28], sizes = [8, 4], strides = [1, 1]} : vector<8x32xbf16> to vector<8x4xbf16>
    %123 = vector.extract_strided_slice %8 {offsets = [0, 28], sizes = [8, 4], strides = [1, 1]} : vector<8x32xbf16> to vector<8x4xbf16>
    %cst_32 = arith.constant dense<0.000000e+00> : vector<8x8xf32>
    %124 = tpu.matmul %121, %122, %cst_32 {dimension_numbers = #tpu.dot_dimension_numbers<[1], [1], [0], [0], [0, 0, 1, 0], [], []>} : vector<8x4xbf16>, vector<8x4xbf16>, vector<8x8xf32> -> vector<8x8xf32>
    %cst_33 = arith.constant dense<0xFF800000> : vector<8xf32>
    %125 = vector.multi_reduction <maximumf>, %124, %cst_33 [1] : vector<8x8xf32> to vector<8xf32>
    %126 = vector.shape_cast %125 : vector<8xf32> to vector<8x1xf32>
    %127 = vector.broadcast %126 : vector<8x1xf32> to vector<8x8xf32>
    %128 = arith.subf %124, %127 : vector<8x8xf32>
    %129 = math.exp %128 : vector<8x8xf32>
    %cst_34 = arith.constant dense<0.000000e+00> : vector<8xf32>
    %130 = vector.multi_reduction <add>, %129, %cst_34 [1] : vector<8x8xf32> to vector<8xf32>
    %131 = vector.shape_cast %130 : vector<8xf32> to vector<8x1xf32>
    %132 = arith.truncf %129 : vector<8x8xf32> to vector<8x8xbf16>
    %cst_35 = arith.constant dense<0.000000e+00> : vector<8x4xf32>
    %133 = tpu.matmul %132, %123, %cst_35 {dimension_numbers = #tpu.dot_dimension_numbers<[1], [0], [0], [1], [0, 0, 1, 1], [], []>} : vector<8x8xbf16>, vector<8x4xbf16>, vector<8x4xf32> -> vector<8x4xf32>
    %134 = tpu.reciprocal %131 {approx = true} : vector<8x1xf32> -> vector<8x1xf32>
    %135 = vector.broadcast %134 : vector<8x1xf32> to vector<8x4xf32>
    %136 = arith.mulf %133, %135 : vector<8x4xf32>
    %137 = tpu.concatenate %24, %40, %56, %72, %88, %104, %120, %136 in 1 : vector<8x4xf32>, vector<8x4xf32>, vector<8x4xf32>, vector<8x4xf32>, vector<8x4xf32>, vector<8x4xf32>, vector<8x4xf32>, vector<8x4xf32> -> vector<8x32xf32>
    %138 = arith.truncf %137 : vector<8x32xf32> to vector<8x32xbf16>
    %c0_36 = arith.constant 0 : index
    %c0_37 = arith.constant 0 : index
    %139 = vector.load %arg6[%c0_36, %c0_37] : memref<32x32xbf16, #tpu.memory_space<vmem>>, vector<32x32xbf16>
    %cst_38 = arith.constant dense<0.000000e+00> : vector<8x32xf32>
    %140 = tpu.matmul %138, %139, %cst_38 {dimension_numbers = #tpu.dot_dimension_numbers<[1], [0], [0], [1], [0, 0, 1, 1], [], []>} : vector<8x32xbf16>, vector<32x32xbf16>, vector<8x32xf32> -> vector<8x32xf32>
    %c0_39 = arith.constant 0 : index
    %c0_40 = arith.constant 0 : index
    %141 = vector.load %arg7[%c0_39, %c0_40] : memref<1x32xf32, #tpu.memory_space<vmem>>, vector<1x32xf32>
    %142 = vector.broadcast %141 : vector<1x32xf32> to vector<8x32xf32>
    %143 = arith.addf %140, %142 : vector<8x32xf32>
    %c0_41 = arith.constant 0 : index
    %c0_42 = arith.constant 0 : index
    %c0_43 = arith.constant 0 : index
    %144 = vector.load %arg8[%c0_41, %c0_42, %c0_43] : memref<1x8x32xf32, #tpu.memory_space<vmem>>, vector<1x8x32xf32>
    %145 = vector.shape_cast %144 : vector<1x8x32xf32> to vector<8x32xf32>
    %146 = vector.shape_cast %143 : vector<8x32xf32> to vector<1x8x32xf32>
    tpu.vector_store %arg8[%c0_41, %c0_42, %c0_43], %146 {strides = array<i32>} : memref<1x8x32xf32, #tpu.memory_space<vmem>>, vector<1x8x32xf32>,
    return
  }
  func.func @transform_0(%arg0: i32, %arg1: i32) -> (i32, i32, i32) {
    %c0_i32 = arith.constant 0 : i32
    %c0_i32_0 = arith.constant 0 : i32
    %c0_i32_1 = arith.constant 0 : i32
    return %arg0, %c0_i32, %c0_i32_0 : i32, i32, i32
  }
  func.func @transform_1(%arg0: i32, %arg1: i32) -> (i32, i32) {
    %c0_i32 = arith.constant 0 : i32
    %c0_i32_0 = arith.constant 0 : i32
    %c0_i32_1 = arith.constant 0 : i32
    return %c0_i32, %c0_i32_0 : i32, i32
  }
  func.func @transform_2(%arg0: i32, %arg1: i32) -> (i32, i32) {
    %c0_i32 = arith.constant 0 : i32
    %c0_i32_0 = arith.constant 0 : i32
    %c0_i32_1 = arith.constant 0 : i32
    return %c0_i32, %c0_i32_0 : i32, i32
  }
  func.func @transform_3(%arg0: i32, %arg1: i32) -> (i32, i32) {
    %c0_i32 = arith.constant 0 : i32
    %c0_i32_0 = arith.constant 0 : i32
    %c0_i32_1 = arith.constant 0 : i32
    return %c0_i32, %c0_i32_0 : i32, i32
  }
  func.func @transform_4(%arg0: i32, %arg1: i32) -> (i32, i32) {
    %c0_i32 = arith.constant 0 : i32
    %c0_i32_0 = arith.constant 0 : i32
    %c0_i32_1 = arith.constant 0 : i32
    return %c0_i32, %c0_i32_0 : i32, i32
  }
  func.func @transform_5(%arg0: i32, %arg1: i32) -> (i32, i32) {
    %c0_i32 = arith.constant 0 : i32
    %c0_i32_0 = arith.constant 0 : i32
    %c0_i32_1 = arith.constant 0 : i32
    return %c0_i32, %c0_i32_0 : i32, i32
  }
  func.func @transform_6(%arg0: i32, %arg1: i32) -> (i32, i32, i32) {
    %c0_i32 = arith.constant 0 : i32
    %c0_i32_0 = arith.constant 0 : i32
    return %arg0, %arg1, %c0_i32 : i32, i32, i32
  }
}

</mosaic_0001>

<bundles_post_ra>
// kernel: tpu_custom_call.1
= control target key start
LH: loop header
LB: loop body
LE: loop exit
PB: predicated region body
PF: predicated region fallthrough
CT: control target
= control target key end

     0   :  { %s2731_s0 = inlined_call_operand.hbm [shape: bf16[2,8,32], index: 0, kind: input, shape index: {}]   ;;  %s2732_s1 = inlined_call_operand.hbm [shape: bf16[32,32], index: 1, kind: input, shape index: {}]   ;;  %s2733_s2 = inlined_call_operand.hbm [shape: bf16[32,32], index: 2, kind: input, shape index: {}]   ;;  %s2734_s3 = inlined_call_operand.hbm [shape: bf16[32,32], index: 3, kind: input, shape index: {}]   ;;  %s2735_s4 = inlined_call_operand.hbm [shape: bf16[32,32], index: 4, kind: input, shape index: {}]   ;;  %s2736_s5 = inlined_call_operand.vmem [shape: f32[1,32], index: 5, kind: input, shape index: {}]   ;;  %s2737_s6 = inlined_call_operand.hbm [shape: f32[2,8,32], index: 6, kind: output, shape index: {}]  }
   0x1   :  { %2738 = sst [smem:[#allocation19_spill]] %s2732_s1 }
   0x2   :  { %2739 = sst [smem:[#allocation20_spill]] %s2733_s2 }
   0x3   :  { %2740 = sst [smem:[#allocation21_spill]] %s2734_s3 }
   0x4   :  { %11 = vsyncpa [#allocation6], 0 }
   0x5   :  { %13 = vsyncpa [#allocation6 + $0x1], 0 }
   0x6   :  { %14 = vsyncpa [#allocation9], 0 }
   0x7   :  { %15 = vsyncpa [#allocation12], 0 }
   0x8   :  { %16 = vsyncpa [#allocation7], 0 }
   0x9   :  { %18 = vsyncpa [#allocation7 + $0x1], 0  ;;  %s2331_s21 = smov 0   ;;  %s2333_s22 = smov 0  }
   0xa   :  { %s2335_s23 = smov 0   ;;  %s2337_s24 = smov 0  }
   0xb   :  { %s2339_s25 = smov 0   ;;  %s2341_s26 = smov 0  }
   0xc LB: > { %s1661_s27 = sadd.s32 4294967295, %s2270_s26   ;;  %p1663_p0 = scmp.ge.s32.totalorder %s2270_s26, 1  ;;  %s2270_s26 = sphi %s2341_s26, %s24_s26   ;;  %s2266_s25 = sphi %s2339_s25, %s2758_s25   ;;  %s2262_s24 = sphi %s2337_s24, %s2757_s24   ;;  %s2258_s23 = sphi %s2335_s23, %s2756_s23   ;;  %s2254_s22 = sphi %s2333_s22, %s2755_s22   ;;  %s2250_s21 = sphi %s2331_s21, %s2754_s21  }
   0xd   : > { %p2365_p1 = scmp.eq.s32.totalorder %s1661_s27, 0  ;;  %p200_p2 = scmp.lt.s32.totalorder %s2270_s26, 3 }
   0xe   : > { %s2272_s30 = smov [#allocation8]   ;;  %s2273_s9 = smov [#allocation11]  }
   0xf   : > { %p2370_p3 = pnand %p1663_p0, %p200_p2  ;;  %s212_s7 = sshll.u32 %s2272_s30, 4  ;;  %s213_s7 = int_to_ptr.vmem [resolvable:$true] %s212_s7 }
  0x10   : > { %s238_s10 = sshll.u32 %s2273_s9, 4  ;;  %s2274_s11 = smov [#allocation10]   ;;  %s239_s10 = int_to_ptr.vmem [resolvable:$true] %s238_s10 }
  0x11   : > { %p1906_p4 = pneg %p2370_p3  ;;  %s225_s12 = sshll.u32 %s2274_s11, 4  ;;  %s226_s12 = int_to_ptr.vmem [resolvable:$true] %s225_s12 }
  0x12   : > { %s2061_s13 = scalar_lea.vmem %s213_s7, 256  ;;  %p2069_p11 = scmp.lt.s32.totalorder %s213_s7, %s213_s7 }
  0x13   : > { %p2379_p6 = pnand %p1906_p4, %p2365_p1  ;;  %p2062_p8 = scmp.ne.s32.totalorder %s213_s7, %s2061_s13 }
  0x14   : > { %p2070_p12 = scmp.lt.s32.totalorder %s2061_s13, %s2061_s13 }
  0x15   : > { %p2052_p7 = pneg %p2379_p6 }
  0x16   : > { %p2071_p13 = por %p2070_p12, %p2069_p11 }
  0x17   : > { %p2064_p9 = pnand %p2062_p8, %p2052_p7 }
  0x19   : > { %p2065_p10 = pneg %p2064_p9 }
  0x1b   : > { %p2072_p0 = pnand %p2071_p13, %p2065_p10 }
  0x1d   : > { %2075 = shalt.err (!%p2072_p0)
}
  0x1e   : > { %s2275_s14 = smov 64   ;;  %s2276_s15 = smov 4  }
  0x1f   : > { %s2744_s1 = sld [smem:[#allocation19_spill]]  ;;  %s2087_s18 = scalar_lea.vmem %s239_s10, 256 }
  0x20   : > { %p2088_p2 = scmp.ne.s32.totalorder %s239_s10, %s2087_s18  ;;  %p2095_p9 = scmp.lt.s32.totalorder %s239_s10, %s239_s10 }
  0x21   : > { %p2096_p10 = scmp.lt.s32.totalorder %s2087_s18, %s2087_s18 }
  0x22   : > { %p2090_p4 = pnand %p2088_p2, %p2052_p7 }
  0x23   : > { %p2097_p11 = por %p2096_p10, %p2095_p9 }
  0x24   : > { %p2091_p8 = pneg %p2090_p4 }
  0x25   : > { %1909 = dma.hbm_to_vmem [thread:$0]  (!%p2379_p6), %s2744_s1, 256, %s213_s7, [#allocation9], %s2275_s14, %s2275_s14, %s2276_s15  }
  0x26   : > { %p2098_p12 = pnand %p2097_p11, %p2091_p8 }
  0x28   : > { %2101 = shalt.err (!%p2098_p12)
}
  0x29   : > { %s2745_s3 = sld [smem:[#allocation21_spill]]  ;;  %s2113_s30 = scalar_lea.vmem %s226_s12, 256 }
  0x2a   : > { %p2114_p13 = scmp.ne.s32.totalorder %s226_s12, %s2113_s30  ;;  %p2121_p4 = scmp.lt.s32.totalorder %s226_s12, %s226_s12 }
  0x2b   : > { %p2122_p8 = scmp.lt.s32.totalorder %s2113_s30, %s2113_s30 }
  0x2c   : > { %p2116_p0 = pnand %p2114_p13, %p2052_p7 }
  0x2d   : > { %p2123_p9 = por %p2122_p8, %p2121_p4 }
  0x2e   : > { %p2117_p2 = pneg %p2116_p0 }
  0x2f   : > { %1915 = dma.hbm_to_vmem [thread:$0]  (!%p2379_p6), %s2745_s3, 256, %s239_s10, [#allocation12], %s2275_s14, %s2275_s14, %s2276_s15  }
  0x30   : > { %p2124_p10 = pnand %p2123_p9, %p2117_p2 }
  0x32   : > { %2127 = shalt.err (!%p2124_p10)
}
  0x33   : > { %s2746_s2 = sld [smem:[#allocation20_spill]]  ;;  %s2277_s10 = smov [#allocation13]  }
  0x34   : > { %s251_s11 = sshll.u32 %s2277_s10, 4  ;;  %s252_s11 = int_to_ptr.vmem [resolvable:$true] %s251_s11 }
  0x35   : > { %s2139_s13 = scalar_lea.vmem %s252_s11, 256  ;;  %p2147_p0 = scmp.lt.s32.totalorder %s252_s11, %s252_s11 }
  0x36   : > { %p2140_p11 = scmp.ne.s32.totalorder %s252_s11, %s2139_s13  ;;  %p2148_p2 = scmp.lt.s32.totalorder %s2139_s13, %s2139_s13 }
  0x38   : > { %p2142_p12 = pnand %p2140_p11, %p2052_p7  ;;  %p2149_p4 = por %p2148_p2, %p2147_p0 }
  0x39   : > { %1912 = dma.hbm_to_vmem [thread:$0]  (!%p2379_p6), %s2746_s2, 256, %s226_s12, [#allocation9], %s2275_s14, %s2275_s14, %s2276_s15  }
  0x3a   : > { %p2143_p13 = pneg %p2142_p12 }
  0x3c   : > { %p2150_p8 = pnand %p2149_p4, %p2143_p13 }
  0x3e   : > { %2153 = shalt.err (!%p2150_p8)
}
  0x3f   : > { %1918 = dma.hbm_to_vmem [thread:$0]  (!%p2379_p6), %s2735_s4, 256, %s252_s11, [#allocation12], %s2275_s14, %s2275_s14, %s2276_s15  }
  0x40   : > { %s1662_s8 = sadd.s32 4294967294, %s2270_s26   ;;  %s36_s17 = sadd.s32 1, %s2266_s25 }
  0x41   : > { %p38_p7 = scmp.ge.s32.totalorder %s36_s17, 2  ;;  %s43_s18 = sadd.s32 1, %s2258_s23 }
  0x42   : > { %p50_p9 = scmp.ne.s32.totalorder %s2258_s23, %s2254_s22  ;;  %p51_p10 = scmp.eq.s32.totalorder %s2270_s26, 0 }
  0x43   : > { %s2760_s17 = smov (%p38_p7, %s36_s17), 0  ;;  %p56_p12 = scmp.ne.s32.totalorder %s2254_s22, %s2250_s21 }
  0x44   : > { %p2437_p11 = por %p51_p10, %p50_p9  ;;  %s40_s14 = ssub.s32 %s2266_s25, %s2760_s17 }
  0x45   : > { %p187_p6 = scmp.eq.s32.totalorder %s1661_s27, 1  ;;  %p41_p13 = scmp.eq.s32.totalorder %s40_s14, 0 }
  0x46   : > { %p2449_p0 = por %p2365_p1, %p56_p12  ;;  %p193_p4 = scmp.eq.s32.totalorder %s1662_s8, 1 }
  0x47   : > { %p2453_p2 = por %p187_p6, %p50_p9  ;;  %p1931_p7 = scmp.lt.s32.totalorder %s2270_s26, 2 }
  0x48   : > { %s2458_s30 = scalar_select %p41_p13, %s2258_s23, %s43_s18  }
  0x49   : > { %p2460_p8 = por %p193_p4, %p56_p12  ;;  %s268_s9 = sand.u32 1, %s2258_s23  }
  0x4a   : > { %s1670_s27 = sshll.u32 %s2266_s25, 6  ;;  %s1669_s10 = sshll.u32 %s268_s9, 2 }
  0x4b   : > { %s2750_s7 = scalar_select %p2460_p8, 1, 0 }
  0x4c   : > { %s277_s12 = scalar_lea.hbm %s2731_s0, %s1670_s27  ;;  %s272_s16 = scalar_lea.vmem [#allocation5], %s1669_s10 }
  0x4d   : > { %s279_s14 = sshll.u32 %s272_s16, 4  ;;  %p2472_p9 = pnand %p1931_p7, %p2437_p11  ;;  %s280_s14 = int_to_ptr.vmem [resolvable:$true] %s279_s14 }
  0x4e   : > { %s269_s8 = scalar_lea.sflag [#allocation6], %s268_s9  ;;  %s2167_s18 = scalar_lea.vmem %s280_s14, 64 }
  0x4f   : > { %p2156_p10 = pneg %p2472_p9  ;;  %p2168_p12 = scmp.ne.s32.totalorder %s280_s14, %s2167_s18 }
  0x50   : > { %s2278_s2 = smov [#allocation5]  }
  0x51   : > { %p2170_p6 = pnand %p2168_p12, %p2156_p10  ;;  %s2172_s3 = sshll.u32 %s2278_s2, 4  ;;  %s2173_s3 = int_to_ptr.vmem [resolvable:$false] %s2172_s3 }
  0x52   : > { %s2174_s27 = scalar_lea.vmem %s2173_s3, 128  ;;  %p2175_p4 = scmp.lt.s32.totalorder %s280_s14, %s2173_s3 }
  0x53   : > { %p2171_p13 = pneg %p2170_p6  ;;  %p2176_p5 = scmp.lt.s32.totalorder %s2174_s27, %s2167_s18 }
  0x55   : > { %p2177_p8 = por %p2176_p5, %p2175_p4 }
  0x57   : > { %p2178_p11 = pnand %p2177_p8, %p2171_p13 }
  0x59   : > { %2181 = shalt.err (!%p2178_p11)
}
  0x5a   : > { %1922 = dma.hbm_to_vmem [thread:$0]  (!%p2472_p9), %s277_s12, 64, %s280_s14, %s269_s8  }
  0x5b   : > { %288 = sbr.rel (%p2370_p3) target bundleno = 1390 (0x56e), region = 44  ;;  %s2483_s19 = sand.u32 (!%p2370_p3), 1, %s2254_s22  }
  0x5c   : > { %s1672_s2 = sshll.u32 (!%p2370_p3), %s2483_s19, 2  ;;  %s291_s9 = scalar_lea.sflag (!%p2370_p3), [#allocation6], %s2483_s19 }
  0x5d   : > { %s294_s10 = scalar_lea.vmem (!%p2370_p3), [#allocation5], %s1672_s2 }
  0x60   : > { %2233 = dma.done.wait (%p2449_p0), %s291_s9, 64  }
  0x61   : > { %2235 = vsyncadd (%p2449_p0), %s291_s9, 4294967232 }
  0x62   : > { %2237 = dma.done.wait (%p2365_p1), [#allocation9], 512  }
  0x63   : > { %2239 = vsyncadd (%p2365_p1), [#allocation9], 4294966784 }
  0x64   : > { %2241 = dma.done.wait (%p2365_p1), [#allocation12], 512  }
  0x65   : > { %2243 = vsyncadd (%p2365_p1), [#allocation12], 4294966784  ;;  %v2279_v0 = vmov 0.0   ;;  %vm2280_vm0 = vmmov 0   ;;  %v2007_v1 = vld [vmem:[#allocation10 + $0x8] sm:$0xff]   ;;  %v2008_v2 = vld [vmem:[#allocation8 + $0x8] sm:$0xff]  }
  0x66   : > { %1766 = vmatprep.subr.bf16.mxu1 %v2279_v0  ;;  %1758 = vmatprep.subr.bf16.mxu0 %v2279_v0  ;;  %v2009_v3 = vld [vmem:[#allocation10] sm:$0xff]   ;;  %v2010_v4 = vld [vmem:[#allocation8] sm:$0xff]   ;;  %vm361_vm1 = vcmask 261120   ;;  %v344_v5 = vld [vmem:[%s294_s10] sm:$0xf]  ;;  %vm406_vm2 = vcmask 257024  }
  0x67   : > { %1770 = vmatprep.mubr.msk.bf16.mxu1 %vm2280_vm0, %v2279_v0  ;;  %1762 = vmatprep.mubr.msk.bf16.mxu0 %vm2280_vm0, %v2279_v0  ;;  %v2011_v6 = vld [vmem:[#allocation11 + $0x8] sm:$0xff]   ;;  %v2012_v7 = vld [vmem:[#allocation11] sm:$0xff]   ;;  %vm532_vm3 = vcmask 31744   ;;  %s2281_s1 = smov 120   ;;  %s2282_s3 = smov 124   ;;  %vm593_vm4 = vcmask 1043456  }
  0x68   : > { %1767 = vmatpush3.bf16.msra.mxu1 %v2007_v1  ;;  %1759 = vmatpush3.bf16.msra.mxu0 %v2008_v2  ;;  %s2283_s28 = smov 116   ;;  %s2284_s29 = smov 112   ;;  %vm579_vm5 = vcmask 64512   ;;  %vm1448_vm6 = vcmask 97280   ;;  %vm1450_vm7 = vcmask 130048   ;;  %vm1452_vm8 = vcmask 162816  }
  0x69   : > { %1768 = vmatprep.subr.bf16.mxu1 %v2279_v0  ;;  %1760 = vmatprep.subr.bf16.mxu0 %v2279_v0  ;;  %s2285_s15 = smov 108   ;;  %s2286_s11 = smov 104   ;;  %vm1454_vm9 = vcmask 195584   ;;  %vm1456_vm10 = vcmask 228352  }
  0x6a   : > { %s2287_s13 = smov 100   ;;  %s2288_s12 = smov 4  }
  0x6b   : > { %s2289_s16 = smov 8   ;;  %s2290_s14 = smov 12  }
  0x6c   : > { %1769 = vmatpush3.bf16.msra.mxu1 %v2009_v3  ;;  %1761 = vmatpush3.bf16.msra.mxu0 %v2010_v4  ;;  %s2291_s8 = smov 16   ;;  %s2292_s18 = smov 20  }
  0x6d   : > { %1782 = vmatprep.subr.bf16.mxu1 %v2279_v0  ;;  %1774 = vmatprep.subr.bf16.mxu0 %v2279_v0  ;;  %s2293_s27 = smov 24   ;;  %s2294_s2 = smov 28  }
  0x6e   : > { %s1677_s9 = sshll.u32 %s2483_s19, 3 }
  0x6f   : > { %1771 = vmatmul.mubr.msk.bf16.vlgmr.msra.gmra.mxu1 %vm361_vm1, %v344_v5  ;;  %1763 = vmatmul.mubr.msk.bf16.vlgmr.msra.gmra.mxu0 %vm361_vm1, %v344_v5 }
  0x70   : > { %1784 = vmatprep.mubr.msk.bf16.mxu1 %vm2280_vm0, %v2279_v0  ;;  %1775 = vmatpush3.bf16.msra.mxu0 %v2011_v6 }
  0x71   : > { %1778 = vmatprep.mubr.msk.bf16.mxu0 %vm2280_vm0, %v2279_v0  ;;  %1776 = vmatprep.subr.bf16.mxu0 %v2279_v0 }
  0x74   : > { %1777 = vmatpush3.bf16.msra.mxu0 %v2012_v7 }
  0x75   : > { %1788 = vmatprep.subr.bf16.mxu0 %v2279_v0 }
  0x77   : > { %1779 = vmatmul.mubr.msk.bf16.vlgmr.msra.gmra.mxu0 %vm361_vm1, %v344_v5 }
  0x78   : > { %1790 = vmatprep.mubr.msk.bf16.mxu0 %vm2280_vm0, %v2279_v0 }
 0x12f   : > { %v458_v8 = vpop.f32.mrf.mxu1  ;;  %v399_v10 = vpop.f32.mrf.mxu0 }
 0x130   : > { %v464_v9 = vpack.c.bf16 %v458_v8, %v458_v8  ;;  %v405_v12 = vpack.c.bf16 %v399_v10, %v399_v10 }
 0x131   : > { %v1772_v11 = vpop.f32.mrf.mxu1  ;;  %v1764_v13 = vpop.f32.mrf.mxu0 }
 0x132   : > { %465 = vst.msk [vmem:[#allocation3] sm:$0xf] %vm406_vm2, %v464_v9  ;;  %407 = vst.msk [vmem:[#allocation2] sm:$0xf] %vm406_vm2, %v405_v12 }
 0x133   : > { %v461_v14 = vpop.f32.mrf.mxu1  ;;  %v402_v15 = vpop.f32.mrf.mxu0 }
 0x135   : > { %v1773_v16 = vpop.f32.mrf.mxu1  ;;  %v1765_v17 = vpop.f32.mrf.mxu0 }
 0x137   : > { %v516_v23 = vpop.f32.mrf.mxu0 }
 0x138   : > { %v522_v24 = vpack.c.bf16 %v516_v23, %v516_v23 }
 0x139   : > { %v530_v18 = vld [vmem:[#allocation3] sm:$0xf]  ;;  %v529_v21 = vld [vmem:[#allocation2] sm:$0xf]  ;;  %v1780_v25 = vpop.f32.mrf.mxu0 }
 0x13a   : > { %v537_v19 = vsel %vm532_vm3, %v530_v18, 0  ;;  %v1690_v20 = vcombine.low %v530_v18, %v530_v18  ;;  %v1689_v22 = vcombine.low %v529_v21, %v529_v21  ;;  %523 = vst.msk [vmem:[#allocation4] sm:$0xf] %vm406_vm2, %v522_v24 }
 0x13b   : > { %1783 = vmatpush3.bf16.xpose.msra.mxu1 %v537_v19  ;;  %v519_v26 = vpop.f32.mrf.mxu0 }
 0x13c   : > { %760 = vrot.lane.b32.xlu1 %v1690_v20, %s2281_s1  ;;  %647 = vrot.lane.b32.xlu0 %v1690_v20, %s2282_s3 }
 0x13d   : > { %1794 = vmatprep.subr.bf16.mxu1 %v2279_v0  ;;  %v1781_v27 = vpop.f32.mrf.mxu0 }
 0x140   : > { %758 = vrot.lane.b32.xlu1 %v1689_v22, %s2281_s1  ;;  %642 = vrot.lane.b32.xlu0 %v1689_v22, %s2282_s3 }
 0x141   : > { %v531_v28 = vld [vmem:[#allocation4] sm:$0xf] }
 0x142   : > { %1785 = vmatmul.mubr.msk.bf16.vlgmr.msra.gmra.mxu1 %vm532_vm3, %v529_v21  ;;  %v2542_v29 = vcombine.low %v531_v28, %v531_v28  ;;  %v595_v30 = vsel %vm593_vm4, %v531_v28, 0 }
 0x143   : > { %1796 = vmatprep.mubr.msk.bf16.mxu1 %vm2280_vm0, %v2279_v0  ;;  %1789 = vmatpush3.bf16.msra.mxu0 %v595_v30 }
 0x144   : > { %868 = vrot.lane.b32.xlu1 %v1689_v22, %s2283_s28  ;;  %870 = vrot.lane.b32.xlu0 %v1690_v20, %s2283_s28 }
 0x145   : > { %1800 = vmatprep.subr.bf16.mxu0 %v2279_v0 }
 0x148   : > { %978 = vrot.lane.b32.xlu1 %v1689_v22, %s2284_s29  ;;  %980 = vrot.lane.b32.xlu0 %v1690_v20, %s2284_s29 }
 0x14c   : > { %1088 = vrot.lane.b32.xlu1 %v1689_v22, %s2285_s15  ;;  %1090 = vrot.lane.b32.xlu0 %v1690_v20, %s2285_s15 }
 0x150   : > { %1198 = vrot.lane.b32.xlu1 %v1689_v22, %s2286_s11  ;;  %1200 = vrot.lane.b32.xlu0 %v1690_v20, %s2286_s11 }
 0x154   : > { %1308 = vrot.lane.b32.xlu1 %v1689_v22, %s2287_s13  ;;  %1310 = vrot.lane.b32.xlu0 %v1690_v20, %s2287_s13 }
 0x158   : > { %708 = vrot.lane.b32.xlu0 %v2542_v29, %s2282_s3  ;;  %818 = vrot.lane.b32.xlu1 %v2542_v29, %s2281_s1  ;;  %s1711_s3 = sshll.u32 %s2262_s24, 7 }
 0x1ae   : > { %v648_v31 = vpop.permute.xlu0 %647  ;;  %v761_v33 = vpop.permute.xlu1 %760 }
 0x1af   : > { %v653_v32 = vsel %vm532_vm3, %v648_v31, 0  ;;  %v766_v35 = vsel %vm532_vm3, %v761_v33, 0 }
 0x1b0   : > { %1795 = vmatpush3.bf16.xpose.msra.mxu1 %v653_v32 }
 0x1b1   : > { %1806 = vmatprep.subr.bf16.mxu1 %v2279_v0 }
 0x1b2   : > { %v643_v34 = vpop.permute.xlu0 %642  ;;  %v759_v37 = vpop.permute.xlu1 %758 }
 0x1b6   : > { %v871_v36 = vpop.permute.xlu0 %870  ;;  %v869_v40 = vpop.permute.xlu1 %868 }
 0x1b7   : > { %1797 = vmatmul.mubr.msk.bf16.vlgmr.msra.gmra.mxu1 %vm532_vm3, %v643_v34  ;;  %v876_v38 = vsel %vm532_vm3, %v871_v36, 0 }
 0x1b8   : > { %1807 = vmatpush3.bf16.xpose.msra.mxu1 %v766_v35  ;;  %1808 = vmatprep.mubr.msk.bf16.mxu1 %vm2280_vm0, %v2279_v0 }
 0x1b9   : > { %1818 = vmatprep.subr.bf16.mxu1 %v2279_v0 }
 0x1ba   : > { %v981_v39 = vpop.permute.xlu0 %980  ;;  %v979_v43 = vpop.permute.xlu1 %978 }
 0x1bb   : > { %v986_v41 = vsel %vm532_vm3, %v981_v39, 0 }
 0x1be   : > { %v1091_v42 = vpop.permute.xlu0 %1090  ;;  %v1089_v46 = vpop.permute.xlu1 %1088 }
 0x1bf   : > { %1809 = vmatmul.mubr.msk.bf16.vlgmr.msra.gmra.mxu1 %vm532_vm3, %v759_v37  ;;  %v1096_v44 = vsel %vm532_vm3, %v1091_v42, 0 }
 0x1c0   : > { %1819 = vmatpush3.bf16.xpose.msra.mxu1 %v876_v38  ;;  %1820 = vmatprep.mubr.msk.bf16.mxu1 %vm2280_vm0, %v2279_v0 }
 0x1c1   : > { %1830 = vmatprep.subr.bf16.mxu1 %v2279_v0 }
 0x1c2   : > { %v1201_v45 = vpop.permute.xlu0 %1200  ;;  %v1199_v49 = vpop.permute.xlu1 %1198 }
 0x1c3   : > { %v1206_v47 = vsel %vm532_vm3, %v1201_v45, 0 }
 0x1c6   : > { %v1311_v48 = vpop.permute.xlu0 %1310  ;;  %v1309_v51 = vpop.permute.xlu1 %1308 }
 0x1c7   : > { %1821 = vmatmul.mubr.msk.bf16.vlgmr.msra.gmra.mxu1 %vm532_vm3, %v869_v40  ;;  %v1316_v50 = vsel %vm532_vm3, %v1311_v48, 0 }
 0x1c8   : > { %1831 = vmatpush3.bf16.xpose.msra.mxu1 %v986_v41  ;;  %1832 = vmatprep.mubr.msk.bf16.mxu1 %vm2280_vm0, %v2279_v0 }
 0x1c9   : > { %1842 = vmatprep.subr.bf16.mxu1 %v2279_v0 }
 0x1ca   : > { %v709_v5 = vpop.permute.xlu0 %708  ;;  %v819_v37 = vpop.permute.xlu1 %818 }
 0x1cb   : > { %v714_v23 = vsel %vm593_vm4, %v709_v5, 0 }
 0x1cf   : > { %1833 = vmatmul.mubr.msk.bf16.vlgmr.msra.gmra.mxu1 %vm532_vm3, %v979_v43 }
 0x1d0   : > { %1843 = vmatpush3.bf16.xpose.msra.mxu1 %v1096_v44  ;;  %1844 = vmatprep.mubr.msk.bf16.mxu1 %vm2280_vm0, %v2279_v0 }
 0x1d1   : > { %1854 = vmatprep.subr.bf16.mxu1 %v2279_v0 }
 0x1d7   : > { %1845 = vmatmul.mubr.msk.bf16.vlgmr.msra.gmra.mxu1 %vm532_vm3, %v1089_v46 }
 0x1d8   : > { %1855 = vmatpush3.bf16.xpose.msra.mxu1 %v1206_v47  ;;  %1856 = vmatprep.mubr.msk.bf16.mxu1 %vm2280_vm0, %v2279_v0 }
 0x1d9   : > { %1866 = vmatprep.subr.bf16.mxu1 %v2279_v0 }
 0x1df   : > { %1857 = vmatmul.mubr.msk.bf16.vlgmr.msra.gmra.mxu1 %vm532_vm3, %v1199_v49 }
 0x1e0   : > { %1867 = vmatpush3.bf16.xpose.msra.mxu1 %v1316_v50  ;;  %1868 = vmatprep.mubr.msk.bf16.mxu1 %vm2280_vm0, %v2279_v0  ;;  %v824_v50 = vsel %vm593_vm4, %v819_v37, 0 }
 0x1e1   : > { %1878 = vmatprep.subr.bf16.mxu1 %v2279_v0 }
 0x1e7   : > { %1869 = vmatmul.mubr.msk.bf16.vlgmr.msra.gmra.mxu1 %vm532_vm3, %v1309_v51 }
 0x1e8   : > { %1882 = vmatprep.mubr.msk.bf16.mxu1 %vm2280_vm0, %v2279_v0 }
 0x202   : > { %v573_v52 = vpop.f32.mrf.mxu1 }
 0x203   : > { %v580_v53 = vsel %vm579_vm5, %v573_v52, -inf }
 0x204   : > { %v1786_v54 = vpop.f32.mrf.mxu1  ;;  %581 = vmax.xlane.f32.xlu0 %v580_v53 }
 0x206   : > { %v576_v55 = vpop.f32.mrf.mxu1 }
 0x208   : > { %v1787_v56 = vpop.f32.mrf.mxu1 }
 0x277   : > { %v689_v57 = vpop.f32.mrf.mxu1 }
 0x278   : > { %v695_v58 = vsel %vm579_vm5, %v689_v57, -inf }
 0x279   : > { %v1798_v59 = vpop.f32.mrf.mxu1  ;;  %696 = vmax.xlane.f32.xlu1 %v695_v58 }
 0x27b   : > { %v692_v60 = vpop.f32.mrf.mxu1 }
 0x27d   : > { %v1799_v61 = vpop.f32.mrf.mxu1 }
 0x27f   : > { %v802_v62 = vpop.f32.mrf.mxu1 }
 0x280   : > { %v808_v63 = vsel %vm579_vm5, %v802_v62, -inf }
 0x281   : > { %v1810_v1 = vpop.f32.mrf.mxu1  ;;  %809 = vmax.xlane.f32.xlu0 %v808_v63 }
 0x283   : > { %v805_v2 = vpop.f32.mrf.mxu1 }
 0x285   : > { %v1811_v3 = vpop.f32.mrf.mxu1 }
 0x287   : > { %v912_v4 = vpop.f32.mrf.mxu1 }
 0x288   : > { %v918_v6 = vsel %vm579_vm5, %v912_v4, -inf }
 0x289   : > { %v1822_v7 = vpop.f32.mrf.mxu1  ;;  %919 = vmax.xlane.f32.xlu0 %v918_v6 }
 0x28a   : > { %928 = vrot.lane.b32.xlu1 %v2542_v29, %s2283_s28  ;;  %s338_s28 = scalar_lea.vmem [#allocation14], %s1677_s9 }
 0x28b   : > { %v915_v8 = vpop.f32.mrf.mxu1 }
 0x28d   : > { %v1823_v9 = vpop.f32.mrf.mxu1  ;;  %v582_v10 = vpop.xlane.xlu0 %581 }
 0x28e   : > { %v583_v11 = vsub.f32 %v573_v52, %v582_v10 }
 0x28f   : > { %v2591_v12 = vpop.f32.mrf.mxu1 }
 0x290   : > { %v584_v13 = vmul.f32 1.442695, %v583_v11  ;;  %v1028_v33 = vsel %vm579_vm5, %v2591_v12, -inf }
 0x291   : > { %v1834_v14 = vpop.f32.mrf.mxu1 }
 0x292   : > { %2018 = vpow2.f32 %v584_v13 }
 0x293   : > { %v1025_v15 = vpop.f32.mrf.mxu1 }
 0x295   : > { %v1835_v16 = vpop.f32.mrf.mxu1 }
 0x297   : > { %v2593_v17 = vpop.f32.mrf.mxu1 }
 0x298   : > { %v1138_v34 = vsel %vm579_vm5, %v2593_v17, -inf }
 0x299   : > { %v1846_v18 = vpop.f32.mrf.mxu1 }
 0x29b   : > { %v1135_v19 = vpop.f32.mrf.mxu1 }
 0x29d   : > { %v1847_v20 = vpop.f32.mrf.mxu1 }
 0x29f   : > { %v2595_v21 = vpop.eup %2018  ;;  %v2597_v22 = vpop.f32.mrf.mxu1  ;;  %1038 = vrot.lane.b32.xlu0 %v2542_v29, %s2284_s29  ;;  %s1542_s29 = sshll.u32 %s338_s28, 4  ;;  %s2684_s29 = int_to_ptr.vmem [resolvable:$true] %s1542_s29 }
 0x2a0   : > { %v589_v24 = vpack.c.bf16 %v2595_v21, %v2595_v21  ;;  %v1248_v36 = vsel %vm579_vm5, %v2597_v22, -inf  ;;  %s2182_s24 = scalar_lea.vmem %s2684_s29, 128 }
 0x2a1   : > { %v1858_v25 = vpop.f32.mrf.mxu1  ;;  %p2183_p1 = scmp.ne.s32.totalorder %s2684_s29, %s2182_s24 }
 0x2a2   : > { %1791 = vmatmul.mubr.msk.bf16.vlgmr.msra.gmra.mxu0 %vm579_vm5, %v589_v24 }
 0x2a3   : > { %v1245_v26 = vpop.f32.mrf.mxu1  ;;  %1801 = vmatpush3.bf16.msra.mxu0 %v714_v23  ;;  %1802 = vmatprep.mubr.msk.bf16.mxu0 %vm2280_vm0, %v2279_v0  ;;  %p2184_p3 = pnand %p2183_p1, %p2453_p2 }
 0x2a4   : > { %1812 = vmatprep.subr.bf16.mxu0 %v2279_v0 }
 0x2a5   : > { %v1859_v27 = vpop.f32.mrf.mxu1  ;;  %p2185_p5 = pneg %p2184_p3 }
 0x2a6   : > { %v586_v27 = vsel %vm579_vm5, %v2595_v21, 0.0 }
 0x2a7   : > { %v2608_v28 = vpop.f32.mrf.mxu1 }
 0x2a8   : > { %v1358_v35 = vsel %vm579_vm5, %v2608_v28, -inf }
 0x2a9   : > { %v1870_v30 = vpop.f32.mrf.mxu1 }
 0x2ab   : > { %v1355_v31 = vpop.f32.mrf.mxu1 }
 0x2ad   : > { %v1871_v32 = vpop.f32.mrf.mxu1 }
 0x2ae   : > { %1029 = vmax.xlane.f32.xlu1 %v1028_v33 }
 0x2b2   : > { %1139 = vmax.xlane.f32.xlu1 %v1138_v34 }
 0x2b6   : > { %1359 = vmax.xlane.f32.xlu1 %v1358_v35 }
 0x2be   : > { %1249 = vmax.xlane.f32.xlu0 %v1248_v36 }
 0x2c7   : > { %1148 = vrot.lane.b32.xlu1 %v2542_v29, %s2285_s15 }
 0x2d4   : > { %1258 = vrot.lane.b32.xlu0 %v2542_v29, %s2286_s11 }
 0x2d8   : > { %1368 = vrot.lane.b32.xlu0 %v2542_v29, %s2287_s13  ;;  %s2682_s13 = scalar_lea.hbm %s2737_s6, %s1711_s3 }
 0x302   : > { %v697_v38 = vpop.xlane.xlu1 %696 }
 0x303   : > { %v698_v39 = vsub.f32 %v689_v57, %v697_v38 }
 0x305   : > { %v699_v40 = vmul.f32 1.442695, %v698_v39 }
 0x306   : > { %v929_v51 = vpop.permute.xlu1 %928 }
 0x307   : > { %2020 = vpow2.f32 %v699_v40  ;;  %v934_v54 = vsel %vm593_vm4, %v929_v51, 0 }
 0x30a   : > { %v810_v41 = vpop.xlane.xlu0 %809 }
 0x30b   : > { %v811_v42 = vsub.f32 %v802_v62, %v810_v41 }
 0x30d   : > { %v812_v43 = vmul.f32 1.442695, %v811_v42 }
 0x30f   : > { %2022 = vpow2.f32 %v812_v43 }
 0x312   : > { %v920_v44 = vpop.xlane.xlu0 %919 }
 0x313   : > { %v921_v45 = vsub.f32 %v912_v4, %v920_v44 }
 0x314   : > { %v2021_v46 = vpop.eup %2020 }
 0x315   : > { %v922_v47 = vmul.f32 1.442695, %v921_v45  ;;  %v701_v48 = vsel %vm579_vm5, %v2021_v46, 0.0  ;;  %v704_v49 = vpack.c.bf16 %v2021_v46, %v2021_v46 }
 0x316   : > { %702 = vadd.xlane.f32.xlu1 %v701_v48  ;;  %v1039_v56 = vpop.permute.xlu0 %1038 }
 0x317   : > { %2024 = vpow2.f32 %v922_v47  ;;  %1803 = vmatmul.mubr.msk.bf16.vlgmr.msra.gmra.mxu0 %vm579_vm5, %v704_v49  ;;  %v1044_v59 = vsel %vm593_vm4, %v1039_v56, 0 }
 0x318   : > { %1813 = vmatpush3.bf16.msra.mxu0 %v824_v50  ;;  %1814 = vmatprep.mubr.msk.bf16.mxu0 %vm2280_vm0, %v2279_v0 }
 0x319   : > { %1824 = vmatprep.subr.bf16.mxu0 %v2279_v0 }
 0x31c   : > { %v2023_v29 = vpop.eup %2022 }
 0x31d   : > { %v814_v52 = vsel %vm579_vm5, %v2023_v29, 0.0  ;;  %v817_v53 = vpack.c.bf16 %v2023_v29, %v2023_v29 }
 0x31e   : > { %815 = vadd.xlane.f32.xlu0 %v814_v52 }
 0x31f   : > { %1815 = vmatmul.mubr.msk.bf16.vlgmr.msra.gmra.mxu0 %vm579_vm5, %v817_v53 }
 0x320   : > { %1825 = vmatpush3.bf16.msra.mxu0 %v934_v54  ;;  %1826 = vmatprep.mubr.msk.bf16.mxu0 %vm2280_vm0, %v2279_v0 }
 0x321   : > { %1836 = vmatprep.subr.bf16.mxu0 %v2279_v0 }
 0x324   : > { %v2025_v55 = vpop.eup %2024 }
 0x325   : > { %v924_v57 = vsel %vm579_vm5, %v2025_v55, 0.0  ;;  %v927_v58 = vpack.c.bf16 %v2025_v55, %v2025_v55 }
 0x326   : > { %925 = vadd.xlane.f32.xlu0 %v924_v57 }
 0x327   : > { %1827 = vmatmul.mubr.msk.bf16.vlgmr.msra.gmra.mxu0 %vm579_vm5, %v927_v58 }
 0x328   : > { %1837 = vmatpush3.bf16.msra.mxu0 %v1044_v59  ;;  %1838 = vmatprep.mubr.msk.bf16.mxu0 %vm2280_vm0, %v2279_v0 }
 0x329   : > { %1848 = vmatprep.subr.bf16.mxu0 %v2279_v0 }
 0x337   : > { %v1030_v60 = vpop.xlane.xlu1 %1029 }
 0x338   : > { %v1031_v61 = vsub.f32 %v2591_v12, %v1030_v60 }
 0x33a   : > { %v1032_v62 = vmul.f32 1.442695, %v1031_v61 }
 0x33b   : > { %v1140_v63 = vpop.xlane.xlu1 %1139 }
 0x33c   : > { %2026 = vpow2.f32 %v1032_v62  ;;  %v1141_v1 = vsub.f32 %v2593_v17, %v1140_v63  ;;  %v2016_v62 = vld [vmem:[#allocation13 + $0x8] sm:$0xff]  }
 0x33d   : > { %1879 = vmatpush3.bf16.msra.mxu1 %v2016_v62 }
 0x33e   : > { %v1142_v2 = vmul.f32 1.442695, %v1141_v1  ;;  %1880 = vmatprep.subr.bf16.mxu1 %v2279_v0 }
 0x33f   : > { %v1360_v3 = vpop.xlane.xlu1 %1359 }
 0x340   : > { %2028 = vpow2.f32 %v1142_v2  ;;  %v1361_v4 = vsub.f32 %v2608_v28, %v1360_v3 }
 0x342   : > { %v1362_v5 = vmul.f32 1.442695, %v1361_v4 }
 0x343   : > { %v1149_v9 = vpop.permute.xlu1 %1148 }
 0x344   : > { %2030 = vpow2.f32 %v1362_v5  ;;  %v1154_v13 = vsel %vm593_vm4, %v1149_v9, 0 }
 0x347   : > { %v1250_v6 = vpop.xlane.xlu0 %1249 }
 0x348   : > { %v1251_v7 = vsub.f32 %v2597_v22, %v1250_v6  ;;  %v2017_v6 = vld [vmem:[#allocation13] sm:$0xff]  }
 0x349   : > { %v2027_v8 = vpop.eup %2026  ;;  %1881 = vmatpush3.bf16.msra.mxu1 %v2017_v6 }
 0x34a   : > { %v1252_v10 = vmul.f32 1.442695, %v1251_v7  ;;  %v1034_v11 = vsel %vm579_vm5, %v2027_v8, 0.0  ;;  %v1037_v12 = vpack.c.bf16 %v2027_v8, %v2027_v8 }
 0x34b   : > { %1035 = vadd.xlane.f32.xlu1 %v1034_v11  ;;  %v1259_v17 = vpop.permute.xlu0 %1258 }
 0x34c   : > { %2032 = vpow2.f32 %v1252_v10  ;;  %1839 = vmatmul.mubr.msk.bf16.vlgmr.msra.gmra.mxu0 %vm579_vm5, %v1037_v12  ;;  %v1264_v20 = vsel %vm593_vm4, %v1259_v17, 0 }
 0x34d   : > { %v2029_v14 = vpop.eup %2028  ;;  %1849 = vmatpush3.bf16.msra.mxu0 %v1154_v13  ;;  %1850 = vmatprep.mubr.msk.bf16.mxu0 %vm2280_vm0, %v2279_v0 }
 0x34e   : > { %v1144_v15 = vsel %vm579_vm5, %v2029_v14, 0.0  ;;  %1860 = vmatprep.subr.bf16.mxu0 %v2279_v0  ;;  %v1147_v19 = vpack.c.bf16 %v2029_v14, %v2029_v14 }
 0x34f   : > { %1145 = vadd.xlane.f32.xlu0 %v1144_v15  ;;  %v1369_v23 = vpop.permute.xlu0 %1368 }
 0x350   : > { %v1374_v26 = vsel %vm593_vm4, %v1369_v23, 0 }
 0x351   : > { %v2031_v16 = vpop.eup %2030 }
 0x352   : > { %v1364_v18 = vsel %vm579_vm5, %v2031_v16, 0.0  ;;  %v1367_v30 = vpack.c.bf16 %v2031_v16, %v2031_v16 }
 0x353   : > { %1365 = vadd.xlane.f32.xlu0 %v1364_v18 }
 0x354   : > { %1851 = vmatmul.mubr.msk.bf16.vlgmr.msra.gmra.mxu0 %vm579_vm5, %v1147_v19 }
 0x355   : > { %1861 = vmatpush3.bf16.msra.mxu0 %v1264_v20  ;;  %1862 = vmatprep.mubr.msk.bf16.mxu0 %vm2280_vm0, %v2279_v0 }
 0x356   : > { %1872 = vmatprep.subr.bf16.mxu0 %v2279_v0 }
 0x359   : > { %v2033_v22 = vpop.eup %2032 }
 0x35a   : > { %v1254_v24 = vsel %vm579_vm5, %v2033_v22, 0.0  ;;  %v1257_v25 = vpack.c.bf16 %v2033_v22, %v2033_v22 }
 0x35b   : > { %1255 = vadd.xlane.f32.xlu1 %v1254_v24 }
 0x35c   : > { %1863 = vmatmul.mubr.msk.bf16.vlgmr.msra.gmra.mxu0 %vm579_vm5, %v1257_v25 }
 0x35d   : > { %1873 = vmatpush3.bf16.msra.mxu0 %v1374_v26  ;;  %1874 = vmatprep.mubr.msk.bf16.mxu0 %vm2280_vm0, %v2279_v0 }
 0x35f   : > { %587 = vadd.xlane.f32.xlu1 %v586_v27 }
 0x362   : > { %v2666_v28 = vpop.f32.mrf.mxu0 }
 0x364   : > { %v1792_v31 = vpop.f32.mrf.mxu0  ;;  %1875 = vmatmul.mubr.msk.bf16.vlgmr.msra.gmra.mxu0 %vm579_vm5, %v1367_v30 }
 0x366   : > { %v634_v32 = vpop.f32.mrf.mxu0 }
 0x368   : > { %v1793_v33 = vpop.f32.mrf.mxu0 }
 0x39f   : > { %v703_v34 = vpop.xlane.xlu1 %702 }
 0x3a0   : > { %2034 = vrcp.f32 %v703_v34 }
 0x3a7   : > { %v816_v35 = vpop.xlane.xlu0 %815 }
 0x3a8   : > { %2036 = vrcp.f32 %v816_v35 }
 0x3ad   : > { %v2035_v36 = vpop.eup %2034 }
 0x3af   : > { %v926_v37 = vpop.xlane.xlu0 %925 }
 0x3b0   : > { %2038 = vrcp.f32 %v926_v37 }
 0x3b5   : > { %v2037_v42 = vpop.eup %2036 }
 0x3bd   : > { %v2039_v48 = vpop.eup %2038 }
 0x3d4   : > { %v1036_v53 = vpop.xlane.xlu1 %1035 }
 0x3d5   : > { %2040 = vrcp.f32 %v1036_v53 }
 0x3d7   : > { %v750_v38 = vpop.f32.mrf.mxu0 }
 0x3d8   : > { %v757_v39 = vmul.f32 %v2035_v36, %v750_v38  ;;  %v1146_v54 = vpop.xlane.xlu0 %1145 }
 0x3d9   : > { %v1804_v40 = vpop.f32.mrf.mxu0  ;;  %2042 = vrcp.f32 %v1146_v54 }
 0x3da   : > { %1419 = vrot.lane.b32.xlu0 %v757_v39, %s2288_s12  ;;  %v1706_v39 = vld [vmem:[%s2736_s5] ss:$0 sm:$0xff]  ;;  %s1528_s12 = scalar_lea.sflag [#allocation7], %s2483_s19 }
 0x3db   : > { %v753_v21 = vpop.f32.mrf.mxu0 }
 0x3dc   : > { %v1366_v1 = vpop.xlane.xlu0 %1365 }
 0x3dd   : > { %v1805_v41 = vpop.f32.mrf.mxu0 }
 0x3df   : > { %v860_v43 = vpop.f32.mrf.mxu0 }
 0x3e0   : > { %v867_v44 = vmul.f32 %v2037_v42, %v860_v43 }
 0x3e1   : > { %v1816_v45 = vpop.f32.mrf.mxu0 }
 0x3e2   : > { %1423 = vrot.lane.b32.xlu1 %v867_v44, %s2289_s16  ;;  %v2041_v55 = vpop.eup %2040  ;;  %s2295_s16 = smov [#allocation14]  }
 0x3e3   : > { %v863_v46 = vpop.f32.mrf.mxu0 }
 0x3e4   : > { %v1256_v56 = vpop.xlane.xlu1 %1255 }
 0x3e5   : > { %v1817_v47 = vpop.f32.mrf.mxu0  ;;  %2044 = vrcp.f32 %v1256_v56 }
 0x3e6   : > { %v2043_v63 = vpop.eup %2042  ;;  %2046 = vrcp.f32 %v1366_v1 }
 0x3e7   : > { %v970_v49 = vpop.f32.mrf.mxu0 }
 0x3e8   : > { %v977_v50 = vmul.f32 %v2039_v48, %v970_v49  ;;  %v588_v19 = vpop.xlane.xlu1 %587 }
 0x3e9   : > { %v1828_v29 = vpop.f32.mrf.mxu0  ;;  %2048 = vrcp.f32 %v588_v19 }
 0x3ea   : > { %1427 = vrot.lane.b32.xlu1 %v977_v50, %s2290_s14  ;;  %s2186_s14 = sshll.u32 %s2295_s16, 4  ;;  %s2187_s14 = int_to_ptr.vmem [resolvable:$false] %s2186_s14 }
 0x3eb   : > { %v973_v51 = vpop.f32.mrf.mxu0  ;;  %p2189_p0 = scmp.lt.s32.totalorder %s2684_s29, %s2187_s14 }
 0x3ed   : > { %v1829_v52 = vpop.f32.mrf.mxu0 }
 0x3f2   : > { %v2045_v8 = vpop.eup %2044 }
 0x3f3   : > { %v2047_v14 = vpop.eup %2046 }
 0x3f6   : > { %v2049_v23 = vpop.eup %2048 }
 0x3f7   : > { %v638_v25 = vmul.f32 %v2049_v23, %v2666_v28 }
 0x40c   : > { %v1080_v57 = vpop.f32.mrf.mxu0 }
 0x40d   : > { %v1087_v58 = vmul.f32 %v2041_v55, %v1080_v57 }
 0x40e   : > { %v1840_v59 = vpop.f32.mrf.mxu0 }
 0x40f   : > { %1431 = vrot.lane.b32.xlu0 %v1087_v58, %s2291_s8  ;;  %s2188_s8 = scalar_lea.vmem %s2187_s14, 256 }
 0x410   : > { %v1083_v60 = vpop.f32.mrf.mxu0  ;;  %p2190_p8 = scmp.lt.s32.totalorder %s2188_s8, %s2182_s24 }
 0x412   : > { %v1841_v61 = vpop.f32.mrf.mxu0  ;;  %p2191_p7 = por %p2190_p8, %p2189_p0 }
 0x414   : > { %v1190_v2 = vpop.f32.mrf.mxu0  ;;  %p2192_p9 = pnand %p2191_p7, %p2185_p5 }
 0x415   : > { %v1197_v3 = vmul.f32 %v2043_v63, %v1190_v2 }
 0x416   : > { %v1852_v4 = vpop.f32.mrf.mxu0 }
 0x417   : > { %1435 = vrot.lane.b32.xlu1 %v1197_v3, %s2292_s18 }
 0x418   : > { %v1193_v5 = vpop.f32.mrf.mxu0 }
 0x41a   : > { %v1853_v7 = vpop.f32.mrf.mxu0 }
 0x41c   : > { %v1300_v9 = vpop.f32.mrf.mxu0 }
 0x41d   : > { %v1307_v10 = vmul.f32 %v2045_v8, %v1300_v9 }
 0x41e   : > { %v1864_v11 = vpop.f32.mrf.mxu0 }
 0x41f   : > { %1439 = vrot.lane.b32.xlu0 %v1307_v10, %s2293_s27 }
 0x420   : > { %v1303_v12 = vpop.f32.mrf.mxu0 }
 0x422   : > { %v1865_v13 = vpop.f32.mrf.mxu0 }
 0x424   : > { %v1410_v15 = vpop.f32.mrf.mxu0 }
 0x425   : > { %v1417_v16 = vmul.f32 %v2047_v14, %v1410_v15 }
 0x426   : > { %v1876_v0 = vpop.f32.mrf.mxu0 }
 0x427   : > { %1443 = vrot.lane.b32.xlu1 %v1417_v16, %s2294_s2 }
 0x428   : > { %v1413_v17 = vpop.f32.mrf.mxu0 }
 0x42a   : > { %v1877_v18 = vpop.f32.mrf.mxu0 }
 0x44c   : > { %v1420_v22 = vpop.permute.xlu0 %1419 }
 0x44d   : > { %v1446_v27 = vsel %vm532_vm3, %v638_v25, %v1420_v22 }
 0x454   : > { %v1424_v20 = vpop.permute.xlu1 %1423 }
 0x455   : > { %v1447_v30 = vsel %vm579_vm5, %v1446_v27, %v1424_v20 }
 0x45c   : > { %v1428_v24 = vpop.permute.xlu1 %1427 }
 0x45d   : > { %v1449_v32 = vsel %vm1448_vm6, %v1447_v30, %v1428_v24 }
 0x481   : > { %v1432_v26 = vpop.permute.xlu0 %1431 }
 0x482   : > { %v1451_v34 = vsel %vm1450_vm7, %v1449_v32, %v1432_v26 }
 0x489   : > { %v1436_v31 = vpop.permute.xlu1 %1435 }
 0x48a   : > { %v1453_v35 = vsel %vm1452_vm8, %v1451_v34, %v1436_v31 }
 0x491   : > { %v1440_v33 = vpop.permute.xlu0 %1439 }
 0x492   : > { %v1455_v36 = vsel %vm1454_vm9, %v1453_v35, %v1440_v33 }
 0x499   : > { %v1444_v37 = vpop.permute.xlu1 %1443 }
 0x49a   : > { %v1457_v28 = vsel %vm1456_vm10, %v1455_v36, %v1444_v37 }
 0x49b   : > { %v1458_v38 = vpack.c.bf16 %v1457_v28, %v1457_v28 }
 0x49d   : > { %1883 = vmatmul.mubr.msk.bf16.vlgmr.msra.gmra.mxu1 %vm361_vm1, %v1458_v38 }
 0x55d   : > { %v1520_v40 = vpop.f32.mrf.mxu1 }
 0x55e   : > { %v1521_v21 = vadd.f32 %v1706_v39, %v1520_v40 }
 0x55f   : > { %v1884_v41 = vpop.f32.mrf.mxu1 }
 0x560   : > { %1526 = vst.msk [vmem:[%s338_s28] sm:$0xff] %vm361_vm1, %v1521_v21 }
 0x561   : > { %v1523_v42 = vpop.f32.mrf.mxu1 }
 0x562   : > { %2195 = shalt.err (!%p2192_p9)
}
 0x563   : > { %s2196_s18 = scalar_lea.hbm %s2682_s13, 128  ;;  %s2200_s2 = scalar_lea.hbm %s2737_s6, 256 }
 0x564   : > { %p2197_p10 = scmp.ne.s32.totalorder %s2682_s13, %s2196_s18  ;;  %p2201_p13 = scmp.lt.s32.totalorder %s2682_s13, %s2737_s6 }
 0x565   : > { %p2202_p4 = scmp.lt.s32.totalorder %s2200_s2, %s2196_s18 }
 0x566   : > { %p2198_p12 = pnand %p2197_p10, %p2453_p2 }
 0x567   : > { %p2203_p11 = por %p2202_p4, %p2201_p13 }
 0x568   : > { %p2199_p6 = pneg %p2198_p12 }
 0x56a   : > { %p2204_p1 = pnand %p2203_p11, %p2199_p6 }
 0x56c   : > { %2207 = shalt.err (!%p2204_p1)
}
 0x56d   : > { %1904 = dma.vmem_to_hbm [thread:$0]  (%p2453_p2), %s2684_s29, 128, %s2682_s13, %s1528_s12   ;;  %v1885_v43 = vpop.f32.mrf.mxu1 }
 0x56e PF: > { %s1554_s1 = sand.u32 1, %s2250_s21   ;;  %p2752_p3 = scmp.ne.s32.totalorder %s2750_s7, 0 }
 0x56f   : > { %p2753_p5 = scmp.ge.s32.totalorder %s2270_s26, 2  ;;  %s1555_s3 = scalar_lea.sflag [#allocation7], %s1554_s1 }
 0x571   : > { %p1924_p0 = pnand %p2753_p5, %p2752_p3 }
 0x573   : > { %p1925_p8 = pneg %p1924_p0 }
 0x575   : > { %2245 = dma.done.wait (%p1925_p8), %s1555_s3, 128  }
 0x576   : > { %2247 = vsyncadd (%p1925_p8), %s1555_s3, 4294967168  ;;  %s24_s26 = sadd.s32 1, %s2270_s26   ;;  %s2754_s21 = smov %s2254_s22 }
 0x577   : > { %p21_p7 = scmp.ge.s32.totalorder %s24_s26, 4   ;;  %s2755_s22 = smov %s2258_s23 }
 0x578   : > { %s2756_s23 = smov %s2458_s30  ;;  %s2757_s24 = smov %s2266_s25 }
 0x579   : > { %s2758_s25 = smov %s2760_s17  ;;  %23 = sbr.rel (!%p21_p7) target bundleno = 12 (0xc), region = 110 }
 0x57e   :  { %1560 = vsyncpa [#allocation6], 1 }
 0x57f   :  { %1562 = vsyncpa [#allocation6 + $0x1], 1 }
 0x580   :  { %1563 = vsyncpa [#allocation9], 1 }
 0x581   :  { %1564 = vsyncpa [#allocation12], 1 }
 0x582   :  { %1565 = vsyncpa [#allocation7], 1 }
 0x583   :  { %1567 = vsyncpa [#allocation7 + $0x1], 1 }

</bundles_post_ra>
